<compile_context>
chip_gen: v7x
topology: tpu7x:2x2x1
jax: 0.10.0
libtpu: 0.0.40
codegen_flags: <defaults>
</compile_context>

<pallas_src>
import functools

import jax
import jax.numpy as jnp
from jax.experimental import pallas as pl
from jax.experimental.pallas import tpu as pltpu

_MiB = 1024 * 1024


def _vmem_capacity_bytes():
    """Physical VMEM per TensorCore; conservative (v7x, 64 MiB) fallback."""
    try:
        return int(pltpu.get_tpu_info().vmem_capacity_bytes)
    except Exception:
        return 64 * _MiB


def _se_mlp(m, w1t, b1, w2, b2):
    """Squeeze-excite MLP on a (C, 1) fp32 mean column.

    Kept on the VPU/EUP (broadcast-multiply + tiny reductions): with only a
    handful of rows the MXU would run at <1% utilization.
    m: (C,1), w1t: (C,Cr)==w1.T, b1: (1,Cr), w2: (C,Cr), b2: (C,1) — all fp32.
    """
    h = jnp.sum(w1t * m, axis=0, keepdims=True) + b1      # (1, Cr) == w1 @ m + b1
    h = jnp.maximum(h, 0.0)                                # ReLU
    y = jnp.sum(w2 * h, axis=1, keepdims=True) + b2        # (C, 1)  == w2 @ h + b2
    return 1.0 / (1.0 + jnp.exp(-y))                       # sigmoid (exp on EUP)


def _fused_kernel(x_ref, w1t_ref, b1_ref, w2_ref, b2_ref, o_ref, *, hw):
    """Pool + SE-MLP + rescale with the whole sample resident in VMEM."""
    x = x_ref[0]                                            # (C, HW), input dtype
    m = jnp.sum(x, axis=-1, keepdims=True, dtype=jnp.float32) * (1.0 / hw)
    y = _se_mlp(m, w1t_ref[...], b1_ref[...], w2_ref[...], b2_ref[...])  # (C,1) f32
    # Multiply with y kept in fp32 (VPU upconverts per-vreg); cast only the result.
    o_ref[0] = (x * y).astype(o_ref.dtype)


def _pool_mlp_kernel(x_ref, w1t_ref, b1_ref, w2_ref, b2_ref, y_ref, acc_ref,
                     *, hw, ts, ragged):
    """Streaming pass 1: fp32 channel-sum accumulation over spatial tiles,
    SE-MLP folded into the last-tile epilogue (output = channel scales)."""
    s = pl.program_id(1)

    @pl.when(s == 0)
    def _():
        acc_ref[...] = jnp.zeros_like(acc_ref)

    x = x_ref[0]                                            # (C, ts), input dtype
    if ragged:
        # Masked tail: zero the lanes past HW on the (partial) last tile.
        col = jax.lax.broadcasted_iota(jnp.int32, x.shape, 1) + s * ts
        x = jnp.where(col < hw, x, jnp.zeros((), x.dtype))
    # Lane-axis reduce with fp32 accumulation; no full-tile fp32 temporary.
    acc_ref[...] += jnp.sum(x, axis=-1, keepdims=True, dtype=jnp.float32)

    @pl.when(s == pl.num_programs(1) - 1)
    def _():
        m = acc_ref[...] * (1.0 / hw)
        y_ref[0] = _se_mlp(m, w1t_ref[...], b1_ref[...], w2_ref[...], b2_ref[...])


def _apply_kernel(x_ref, y_ref, o_ref):
    """Streaming pass 2: out = x * y, channel scales broadcast over lanes.
    (For ragged tails the partial edge block's out-of-range lanes are dropped
    by Pallas on writeback, so padding values never reach HBM.)"""
    x = x_ref[0]                                            # (C, ts), input dtype
    y = y_ref[0]                                            # (C, 1) fp32
    o_ref[0] = (x * y).astype(o_ref.dtype)                  # cast result, not y


def _pick_spatial_tile(hw, c, itemsize, max_block_bytes):
    """Largest lane-dense spatial tile (multiple of 128) within max_block_bytes.
    Never falls back to a multi-tens-of-MiB full-HW block: ragged extents get a
    capped tile and a masked tail instead."""
    if hw * c * itemsize <= max_block_bytes:
        return hw
    budget = max(128, (max_block_bytes // max(c * itemsize, 1)) // 128 * 128)
    cap = (hw // 128) * 128
    if cap == 0:
        return hw                      # tiny spatial extent: single full block
    t = min(budget, cap)
    if hw % 128 == 0:
        tt = t
        while tt >= 128:               # prefer an exact divisor (no masked tail)
            if hw % tt == 0:
                return tt
            tt -= 128
    return t                           # ragged tail handled via masking


def ca_layer(x, w1, b1, w2, b2, *, spatial_tile=None, fuse=None):
    """x: (B, C, H, W) NCHW. w1: (Cr, C), b1: (Cr,), w2: (C, Cr), b2: (C,)."""
    B, C, H, W = x.shape
    HW = H * W
    Cr = w1.shape[0]
    itemsize = jnp.dtype(x.dtype).itemsize
    x_flat = x.reshape(B, C, HW)

    # Kernel-friendly fp32 parameter layouts (channel dim on sublanes).
    w1t = jnp.asarray(w1, jnp.float32).T               # (C, Cr)
    b1r = jnp.asarray(b1, jnp.float32).reshape(1, Cr)  # (1, Cr)
    w2m = jnp.asarray(w2, jnp.float32)                 # (C, Cr)
    b2c = jnp.asarray(b2, jnp.float32).reshape(C, 1)   # (C, 1)

    usable_vmem = (_vmem_capacity_bytes() * 3) // 4     # leave compiler headroom
    sample_bytes = C * HW * itemsize

    if fuse is None:
        # Fused live set ~= 4x sample (double-buffered in + out) + tiny weights.
        fuse = (spatial_tile is None) and (4 * sample_bytes + 8 * _MiB <= usable_vmem)

    if fuse:
        vmem_limit = min(usable_vmem, max(16 * _MiB, 4 * sample_bytes + 8 * _MiB))
        out_flat = pl.pallas_call(
            functools.partial(_fused_kernel, hw=HW),
            out_shape=jax.ShapeDtypeStruct((B, C, HW), x.dtype),
            grid_spec=pltpu.PrefetchScalarGridSpec(
                num_scalar_prefetch=0,
                grid=(B,),
                in_specs=[
                    pl.BlockSpec((1, C, HW), lambda b: (b, 0, 0)),
                    pl.BlockSpec((C, Cr), lambda b: (0, 0)),
                    pl.BlockSpec((1, Cr), lambda b: (0, 0)),
                    pl.BlockSpec((C, Cr), lambda b: (0, 0)),
                    pl.BlockSpec((C, 1), lambda b: (0, 0)),
                ],
                out_specs=pl.BlockSpec((1, C, HW), lambda b: (b, 0, 0)),
            ),
            compiler_params=pltpu.CompilerParams(
                dimension_semantics=("parallel",),
                vmem_limit_bytes=vmem_limit),
            cost_estimate=pl.CostEstimate(
                flops=2 * B * C * HW + 4 * B * C * Cr,
                transcendentals=B * C,
                bytes_accessed=2 * B * C * HW * itemsize + 4 * (2 * C * Cr + C + Cr)),
        )(x_flat, w1t, b1r, w2m, b2c)
        return out_flat.reshape(B, C, H, W)

    # ---- Streaming two-pass path (sample too large for VMEM residency). ----
    max_block_bytes = 4 * _MiB
    ts = spatial_tile if spatial_tile is not None else _pick_spatial_tile(
        HW, C, itemsize, max_block_bytes)
    assert ts == HW or ts % 128 == 0, "spatial tile must be full HW or a multiple of 128"
    ns = pl.cdiv(HW, ts)
    ragged = (HW % ts) != 0
    block_bytes = C * ts * itemsize
    vmem_limit = min(usable_vmem, max(16 * _MiB, 6 * block_bytes + 4 * _MiB))

    # Pass 1: tiled global-average pool + SE-MLP epilogue -> (B, C, 1) fp32 scales.
    scales = pl.pallas_call(
        functools.partial(_pool_mlp_kernel, hw=HW, ts=ts, ragged=ragged),
        out_shape=jax.ShapeDtypeStruct((B, C, 1), jnp.float32),
        grid_spec=pltpu.PrefetchScalarGridSpec(
            num_scalar_prefetch=0,
            grid=(B, ns),
            in_specs=[
                pl.BlockSpec((1, C, ts), lambda b, s: (b, 0, s)),
                pl.BlockSpec((C, Cr), lambda b, s: (0, 0)),
                pl.BlockSpec((1, Cr), lambda b, s: (0, 0)),
                pl.BlockSpec((C, Cr), lambda b, s: (0, 0)),
                pl.BlockSpec((C, 1), lambda b, s: (0, 0)),
            ],
            out_specs=pl.BlockSpec((1, C, 1), lambda b, s: (b, 0, 0)),
            scratch_shapes=[pltpu.VMEM((C, 1), jnp.float32)],
        ),
        compiler_params=pltpu.CompilerParams(
            dimension_semantics=("parallel", "arbitrary"),
            vmem_limit_bytes=vmem_limit),
        cost_estimate=pl.CostEstimate(
            flops=B * C * HW + 4 * B * C * Cr,
            transcendentals=B * C,
            bytes_accessed=B * C * HW * itemsize + B * C * 4),
    )(x_flat, w1t, b1r, w2m, b2c)

    # Pass 2: lane-dense elementwise rescale, fully pipelined, both axes parallel.
    out_flat = pl.pallas_call(
        _apply_kernel,
        out_shape=jax.ShapeDtypeStruct((B, C, HW), x.dtype),
        grid_spec=pltpu.PrefetchScalarGridSpec(
            num_scalar_prefetch=0,
            grid=(B, ns),
            in_specs=[
                pl.BlockSpec((1, C, ts), lambda b, s: (b, 0, s)),   # x tile
                pl.BlockSpec((1, C, 1), lambda b, s: (b, 0, 0)),    # per-sample scales
            ],
            out_specs=pl.BlockSpec((1, C, ts), lambda b, s: (b, 0, s)),
        ),
        compiler_params=pltpu.CompilerParams(
            dimension_semantics=("parallel", "parallel"),
            vmem_limit_bytes=vmem_limit),
        cost_estimate=pl.CostEstimate(
            flops=B * C * HW, transcendentals=0,
            bytes_accessed=2 * B * C * HW * itemsize + B * C * 4),
    )(x_flat, scales)

    return out_flat.reshape(B, C, H, W)


def ca_layer_ref(x, w1, b1, w2, b2):
    """Pure-JAX reference (mirrors the PyTorch forward)."""
    y = jnp.mean(x, axis=(2, 3), keepdims=True)               # (B, C, 1, 1)
    y = jnp.einsum("oc,bcxy->boxy", w1, y) + b1[None, :, None, None]
    y = jnp.maximum(y, 0.0)
    y = jnp.einsum("oc,bcxy->boxy", w2, y) + b2[None, :, None, None]
    y = jax.nn.sigmoid(y)
    return x * y


if __name__ == "__main__":
    key = jax.random.PRNGKey(0)
    B, C, H, W = 2, 8, 16, 16
    reduction = 4
    Cr = C // reduction

    kx, k1, k2, k3, k4 = jax.random.split(key, 5)
    x = jax.random.normal(kx, (B, C, H, W), dtype=jnp.float32)
    # Conv2d 1x1 weights: (out, in) + bias.
    w1 = jax.random.normal(k1, (Cr, C), dtype=jnp.float32) * 0.1
    b1 = jax.random.normal(k2, (Cr,), dtype=jnp.float32) * 0.1
    w2 = jax.random.normal(k3, (C, Cr), dtype=jnp.float32) * 0.1
    b2 = jax.random.normal(k4, (C,), dtype=jnp.float32) * 0.1

    ref = ca_layer_ref(x, w1, b1, w2, b2)

    # Fused single-pass path (sample is VMEM-resident; read-once / write-once).
    out_fused = jax.block_until_ready(ca_layer(x, w1, b1, w2, b2))
    assert out_fused.shape == (B, C, H, W)
    assert jnp.allclose(out_fused, ref, atol=1e-5, rtol=1e-5), "fused path mismatch"

    # Streaming two-pass path, forced 128-lane spatial tiles (HW=256 -> 2 tiles
    # per sample) to exercise the accumulator + folded SE-MLP epilogue and the
    # pipelined rescale.
    out_tiled = jax.block_until_ready(
        ca_layer(x, w1, b1, w2, b2, spatial_tile=128, fuse=False))
    assert jnp.allclose(out_tiled, ref, atol=1e-5, rtol=1e-5), "tiled path mismatch"

    print("KERNEL_OK")
</pallas_src>

<mosaic_0001>
module attributes {stable_mosaic.version = 11 : i64} {
  func.func @_fused_kernel(%arg0: i32, %arg1: memref<1x8x256xf32, #tpu.memory_space<vmem>>, %arg2: memref<8x2xf32, #tpu.memory_space<vmem>>, %arg3: memref<1x2xf32, #tpu.memory_space<vmem>>, %arg4: memref<8x2xf32, #tpu.memory_space<vmem>>, %arg5: memref<8x1xf32, #tpu.memory_space<vmem>>, %arg6: memref<1x8x256xf32, #tpu.memory_space<vmem>>) attributes {dimension_semantics = [#tpu.dimension_semantics<parallel>], iteration_bounds = array<i64: 2>, scalar_prefetch = 0 : i64, scratch_operands = 0 : i64, tpu.core_type = #tpu.core_type<tc>, window_params = [{transform_indices = @transform_0, window_bounds = array<i64: 1, 8, 256>}, {pipeline_mode = #tpu.pipeline_mode<synchronous>, transform_indices = @transform_1, window_bounds = array<i64: 8, 2>}, {pipeline_mode = #tpu.pipeline_mode<synchronous>, transform_indices = @transform_2, window_bounds = array<i64: 1, 2>}, {pipeline_mode = #tpu.pipeline_mode<synchronous>, transform_indices = @transform_3, window_bounds = array<i64: 8, 2>}, {pipeline_mode = #tpu.pipeline_mode<synchronous>, transform_indices = @transform_4, window_bounds = array<i64: 8, 1>}, {transform_indices = @transform_5, window_bounds = array<i64: 1, 8, 256>}]} {
    %c0 = arith.constant 0 : index
    %c0_0 = arith.constant 0 : index
    %c0_1 = arith.constant 0 : index
    %0 = vector.load %arg1[%c0, %c0_0, %c0_1] : memref<1x8x256xf32, #tpu.memory_space<vmem>>, vector<1x8x256xf32>
    %1 = vector.shape_cast %0 : vector<1x8x256xf32> to vector<8x256xf32>
    %cst = arith.constant dense<0.000000e+00> : vector<8xf32>
    %2 = vector.multi_reduction <add>, %1, %cst [1] : vector<8x256xf32> to vector<8xf32>
    %3 = vector.shape_cast %2 : vector<8xf32> to vector<8x1xf32>
    %cst_2 = arith.constant 3.906250e-03 : f32
    %4 = vector.broadcast %cst_2 : f32 to vector<8x1xf32>
    %5 = arith.mulf %3, %4 : vector<8x1xf32>
    %c0_3 = arith.constant 0 : index
    %c0_4 = arith.constant 0 : index
    %6 = vector.load %arg2[%c0_3, %c0_4] : memref<8x2xf32, #tpu.memory_space<vmem>>, vector<8x2xf32>
    %c0_5 = arith.constant 0 : index
    %c0_6 = arith.constant 0 : index
    %7 = vector.load %arg3[%c0_5, %c0_6] : memref<1x2xf32, #tpu.memory_space<vmem>>, vector<1x2xf32>
    %c0_7 = arith.constant 0 : index
    %c0_8 = arith.constant 0 : index
    %8 = vector.load %arg4[%c0_7, %c0_8] : memref<8x2xf32, #tpu.memory_space<vmem>>, vector<8x2xf32>
    %c0_9 = arith.constant 0 : index
    %c0_10 = arith.constant 0 : index
    %9 = vector.load %arg5[%c0_9, %c0_10] : memref<8x1xf32, #tpu.memory_space<vmem>>, vector<8x1xf32>
    %10 = vector.broadcast %5 : vector<8x1xf32> to vector<8x2xf32>
    %11 = arith.mulf %6, %10 : vector<8x2xf32>
    %cst_11 = arith.constant dense<0.000000e+00> : vector<2xf32>
    %12 = vector.multi_reduction <add>, %11, %cst_11 [0] : vector<8x2xf32> to vector<2xf32>
    %13 = vector.shape_cast %12 : vector<2xf32> to vector<1x2xf32>
    %14 = arith.addf %13, %7 : vector<1x2xf32>
    %cst_12 = arith.constant 0.000000e+00 : f32
    %15 = vector.broadcast %cst_12 : f32 to vector<1x2xf32>
    %16 = arith.maximumf %14, %15 : vector<1x2xf32>
    %17 = vector.broadcast %16 : vector<1x2xf32> to vector<8x2xf32>
    %18 = arith.mulf %8, %17 : vector<8x2xf32>
    %cst_13 = arith.constant dense<0.000000e+00> : vector<8xf32>
    %19 = vector.multi_reduction <add>, %18, %cst_13 [1] : vector<8x2xf32> to vector<8xf32>
    %20 = vector.shape_cast %19 : vector<8xf32> to vector<8x1xf32>
    %21 = arith.addf %20, %9 : vector<8x1xf32>
    %cst_14 = arith.constant 0.000000e+00 : f32
    %22 = vector.broadcast %cst_14 : f32 to vector<8x1xf32>
    %23 = arith.subf %22, %21 : vector<8x1xf32>
    %24 = math.exp %23 : vector<8x1xf32>
    %cst_15 = arith.constant 1.000000e+00 : f32
    %25 = vector.broadcast %cst_15 : f32 to vector<8x1xf32>
    %26 = arith.addf %25, %24 : vector<8x1xf32>
    %cst_16 = arith.constant 1.000000e+00 : f32
    %27 = vector.broadcast %cst_16 : f32 to vector<8x1xf32>
    %28 = arith.divf %27, %26 : vector<8x1xf32>
    %29 = vector.broadcast %28 : vector<8x1xf32> to vector<8x256xf32>
    %30 = arith.mulf %1, %29 : vector<8x256xf32>
    %c0_17 = arith.constant 0 : index
    %c0_18 = arith.constant 0 : index
    %c0_19 = arith.constant 0 : index
    %31 = vector.load %arg6[%c0_17, %c0_18, %c0_19] : memref<1x8x256xf32, #tpu.memory_space<vmem>>, vector<1x8x256xf32>
    %32 = vector.shape_cast %31 : vector<1x8x256xf32> to vector<8x256xf32>
    %33 = vector.shape_cast %30 : vector<8x256xf32> to vector<1x8x256xf32>
    tpu.vector_store %arg6[%c0_17, %c0_18, %c0_19], %33 {strides = array<i32>} : memref<1x8x256xf32, #tpu.memory_space<vmem>>, vector<1x8x256xf32>,
    return
  }
  func.func @transform_0(%arg0: i32) -> (i32, i32, i32) {
    %c0_i32 = arith.constant 0 : i32
    %c0_i32_0 = arith.constant 0 : i32
    %c0_i32_1 = arith.constant 0 : i32
    return %arg0, %c0_i32, %c0_i32_0 : i32, i32, i32
  }
  func.func @transform_1(%arg0: i32) -> (i32, i32) {
    %c0_i32 = arith.constant 0 : i32
    %c0_i32_0 = arith.constant 0 : i32
    %c0_i32_1 = arith.constant 0 : i32
    return %c0_i32, %c0_i32_0 : i32, i32
  }
  func.func @transform_2(%arg0: i32) -> (i32, i32) {
    %c0_i32 = arith.constant 0 : i32
    %c0_i32_0 = arith.constant 0 : i32
    %c0_i32_1 = arith.constant 0 : i32
    return %c0_i32, %c0_i32_0 : i32, i32
  }
  func.func @transform_3(%arg0: i32) -> (i32, i32) {
    %c0_i32 = arith.constant 0 : i32
    %c0_i32_0 = arith.constant 0 : i32
    %c0_i32_1 = arith.constant 0 : i32
    return %c0_i32, %c0_i32_0 : i32, i32
  }
  func.func @transform_4(%arg0: i32) -> (i32, i32) {
    %c0_i32 = arith.constant 0 : i32
    %c0_i32_0 = arith.constant 0 : i32
    %c0_i32_1 = arith.constant 0 : i32
    return %c0_i32, %c0_i32_0 : i32, i32
  }
  func.func @transform_5(%arg0: i32) -> (i32, i32, i32) {
    %c0_i32 = arith.constant 0 : i32
    %c0_i32_0 = arith.constant 0 : i32
    %c0_i32_1 = arith.constant 0 : i32
    return %arg0, %c0_i32, %c0_i32_0 : i32, i32, i32
  }
}

</mosaic_0001>

<bundles_post_ra>
// kernel: tpu_custom_call.1
= control target key start
LH: loop header
LB: loop body
LE: loop exit
PB: predicated region body
PF: predicated region fallthrough
CT: control target
= control target key end

     0   :  { %10 = vsyncpa [#allocation3], 0  ;;  %s750_s0 = inlined_call_operand.hbm [shape: f32[2,8,256], index: 0, kind: input, shape index: {}]   ;;  %s751_s1 = inlined_call_operand.vmem [shape: f32[8,2], index: 1, kind: input, shape index: {}]   ;;  %s752_s2 = inlined_call_operand.vmem [shape: f32[1,2], index: 2, kind: input, shape index: {}]   ;;  %s753_s3 = inlined_call_operand.vmem [shape: f32[8,2], index: 3, kind: input, shape index: {}]   ;;  %s754_s4 = inlined_call_operand.vmem [shape: f32[8,1], index: 4, kind: input, shape index: {}]   ;;  %s755_s5 = inlined_call_operand.hbm [shape: f32[2,8,256], index: 5, kind: output, shape index: {}]  }
   0x1   :  { %12 = vsyncpa [#allocation3 + $0x1], 0 }
   0x2   :  { %13 = vsyncpa [#allocation4], 0 }
   0x3   :  { %15 = vsyncpa [#allocation4 + $0x1], 0  ;;  %s571_s18 = smov 0   ;;  %s573_s19 = smov 0  }
   0x4   :  { %s575_s20 = smov 0   ;;  %s577_s21 = smov 0  }
   0x5 LB: > { %s592_s22 = sadd.s32 4294967295, %s536_s21   ;;  %s371_s23 = sadd.s32 4294967294, %s536_s21   ;;  %s536_s21 = sphi %s577_s21, %s770_s21   ;;  %s532_s20 = sphi %s575_s20, %s769_s20   ;;  %s528_s19 = sphi %s573_s19, %s768_s19   ;;  %s524_s18 = sphi %s571_s18, %s767_s18  }
   0x6   : > { %s596_s24 = sadd.s32 1, %s536_s21   ;;  %s28_s25 = sadd.s32 1, %s532_s20 }
   0x7   : > { %s25_s26 = ssub.s32 %s536_s21, %s596_s24  ;;  %p35_p0 = scmp.ne.s32.totalorder %s532_s20, %s528_s19 }
   0x8   : > { %p26_p1 = scmp.eq.s32.totalorder %s25_s26, 0  ;;  %p36_p2 = scmp.eq.s32.totalorder %s536_s21, 0 }
   0x9   : > { %p41_p3 = scmp.ne.s32.totalorder %s528_s19, %s524_s18  ;;  %p42_p4 = scmp.eq.s32.totalorder %s592_s22, 0 }
   0xa   : > { %s608_s27 = scalar_select %p26_p1, %s532_s20, %s28_s25  }
   0xb   : > { %p610_p5 = por %p36_p2, %p35_p0  ;;  %p614_p6 = por %p42_p4, %p41_p3 }
   0xc   : > { %p149_p7 = scmp.eq.s32.totalorder %s592_s22, 1  ;;  %p155_p8 = scmp.eq.s32.totalorder %s371_s23, 1 }
   0xd   : > { %p399_p10 = scmp.lt.s32.totalorder %s536_s21, 2  ;;  %s187_s7 = sand.u32 1, %s532_s20  }
   0xe   : > { %p621_p11 = por %p149_p7, %p35_p0  ;;  %p625_p12 = por %p155_p8, %p41_p3 }
   0xf   : > { %s385_s8 = sshll.u32 %s536_s21, 8  ;;  %s374_s9 = sshll.u32 %s187_s7, 4 }
  0x10   : > { %s759_s30 = scalar_select %p621_p11, 1, 0 }
  0x11   : > { %s760_s6 = scalar_select %p625_p12, 1, 0 }
  0x12   : > { %s634_s12 = scalar_lea.hbm %s750_s0, %s385_s8  ;;  %s191_s13 = scalar_lea.vmem [#allocation2], %s374_s9 }
  0x13   : > { %s199_s14 = sshll.u32 %s191_s13, 4  ;;  %p638_p13 = pnand %p399_p10, %p610_p5  ;;  %s642_s14 = int_to_ptr.vmem [resolvable:$true] %s199_s14 }
  0x14   : > { %s188_s16 = scalar_lea.sflag [#allocation3], %s187_s7  ;;  %s440_s17 = scalar_lea.hbm %s634_s12, 256 }
  0x15   : > { %p441_p2 = scmp.ne.s32.totalorder %s634_s12, %s440_s17  ;;  %p442_p3 = pneg %p638_p13 }
  0x16   : > { %s445_s26 = scalar_lea.hbm %s750_s0, 512  ;;  %p446_p5 = scmp.lt.u32.totalorder %s634_s12, %s750_s0 }
  0x17   : > { %p443_p4 = pnand %p442_p3, %p441_p2  ;;  %p447_p8 = scmp.lt.u32.totalorder %s445_s26, %s440_s17 }
  0x18   : > { %p449_p9 = scmp.lt.u32.totalorder %s440_s17, %s634_s12 }
  0x19   : > { %p444_p7 = pneg %p443_p4  ;;  %p448_p10 = por %p447_p8, %p446_p5 }
  0x1b   : > { %p450_p0 = por %p449_p9, %p448_p10 }
  0x1d   : > { %p451_p1 = pnand %p450_p0, %p444_p7 }
  0x1f   : > { %454 = shalt.err (!%p451_p1)
}
  0x20   : > { %s455_s7 = scalar_lea.vmem %s642_s14, 256  ;;  %s538_s9 = smov [#allocation2]  }
  0x21   : > { %p456_p2 = scmp.ne.s32.totalorder %s642_s14, %s455_s7  ;;  %s460_s10 = sshll.u32 %s538_s9, 4  ;;  %s461_s10 = int_to_ptr.vmem [resolvable:$false] %s460_s10 }
  0x22   : > { %s462_s11 = scalar_lea.vmem %s461_s10, 512  ;;  %p463_p11 = scmp.lt.s32.totalorder %s642_s14, %s461_s10 }
  0x23   : > { %p458_p4 = pnand %p456_p2, %p442_p3  ;;  %p464_p5 = scmp.lt.s32.totalorder %s462_s11, %s455_s7 }
  0x25   : > { %p459_p12 = pneg %p458_p4  ;;  %p465_p8 = por %p464_p5, %p463_p11 }
  0x27   : > { %p466_p9 = pnand %p465_p8, %p459_p12 }
  0x29   : > { %469 = shalt.err (!%p466_p9)
}
  0x2a   : > { %394 = dma.hbm_to_vmem [thread:$0]  (!%p638_p13), %s634_s12, 256, %s642_s14, %s188_s16  }
  0x2b   : > { %p762_p0 = scmp.lt.s32.totalorder %s536_s21, 3  ;;  %p763_p1 = scmp.ge.s32.totalorder %s536_s21, 1 }
  0x2d   : > { %p205_p3 = pnand %p763_p1, %p762_p0 }
  0x2e   : > { %s676_s13 = sand.u32 (!%p205_p3), 1, %s528_s19  }
  0x2f   : > { %208 = sbr.rel (%p205_p3) target bundleno = 542 (0x21e), region = 40  ;;  %s378_s17 = sshll.u32 (!%p205_p3), %s676_s13, 4 }
  0x30   : > { %s211_s23 = scalar_lea.sflag (!%p205_p3), [#allocation3], %s676_s13  ;;  %s214_s15 = scalar_lea.vmem (!%p205_p3), [#allocation2], %s378_s17 }
  0x36   : > { %515 = dma.done.wait (%p614_p6), %s211_s23, 256  }
  0x37   : > { %517 = vsyncadd (%p614_p6), %s211_s23, 4294967040  ;;  %v241_v0 = vld [vmem:[%s214_s15] sm:$0xff]  ;;  %v242_v1 = vld [vmem:[%s214_s15 + $0x8] sm:$0xff]  ;;  %vm252_vm0 = vcmask 15360   ;;  %v262_v11 = vlaneseq  ;;  %v539_v24 = vmov 0   ;;  %s386_s7 = sshll.u32 %s592_s22, 8 }
  0x38   : > { %v243_v2 = vadd.f32 %v242_v1, %v241_v0  ;;  %v247_v3 = vld [vmem:[%s751_s1] sm:$0xff]  ;;  %434 = vset.pattern.permute.xlu1 %v539_v24  ;;  %435 = vset.pattern.permute.xlu0 %v539_v24  ;;  %s240_s9 = scalar_lea.vmem [#allocation5], %s378_s17  ;;  %s706_s15 = scalar_lea.hbm %s755_s5, %s386_s7 }
  0x39   : > { %v263_v14 = vshrl.u32 %v262_v11, 7  ;;  %v248_v15 = vld [vmem:[%s752_s2] sm:$0x1]  ;;  %s301_s10 = sshll.u32 %s240_s9, 4  ;;  %s287_s12 = scalar_lea.sflag [#allocation4], %s676_s13  ;;  %s708_s10 = int_to_ptr.vmem [resolvable:$true] %s301_s10 }
  0x3a   : > { %244 = vadd.xlane.f32.xlu0 %v243_v2  ;;  %v249_v20 = vld [vmem:[%s753_s3] sm:$0xff]  ;;  %s470_s22 = scalar_lea.vmem %s708_s10, 256  ;;  %p764_p11 = scmp.ne.s32.totalorder %s759_s30, 0 }
  0x3b   : > { %v264_v18 = vsub.s32 0, %v263_v14  ;;  %v250_v25 = vld [vmem:[%s754_s4] sm:$0xff]  ;;  %p471_p6 = scmp.ne.s32.totalorder %s708_s10, %s470_s22  ;;  %s540_s17 = smov [#allocation5]  }
  0x3c   : > { %s474_s14 = sshll.u32 %s540_s17, 4  ;;  %s475_s14 = int_to_ptr.vmem [resolvable:$false] %s474_s14 }
  0x3d   : > { %p472_p12 = pnand %p471_p6, %p764_p11  ;;  %s476_s29 = scalar_lea.vmem %s475_s14, 512 }
  0x3e   : > { %p477_p7 = scmp.lt.s32.totalorder %s708_s10, %s475_s14  ;;  %p478_p10 = scmp.lt.s32.totalorder %s476_s29, %s470_s22 }
  0x3f   : > { %p473_p13 = pneg %p472_p12 }
  0x40   : > { %p479_p2 = por %p478_p10, %p477_p7 }
  0x42   : > { %p480_p4 = pnand %p479_p2, %p473_p13 }
  0xc7   : > { %v245_v4 = vpop.xlane.xlu0 %244 }
  0xc8   : > { %v246_v5 = vmul.f32 0.00390625, %v245_v4 }
  0xca   : > { %v251_v6 = vmul.f32 %v247_v3, %v246_v5 }
  0xcc   : > { %v253_v7 = vsel %vm252_vm0, %v251_v6, 0.0 }
  0xcd   : > { %v254_v8 = vrot.slane %v253_v7, 4 }
  0xcf   : > { %v255_v9 = vadd.f32 %v254_v8, %v253_v7 }
  0xd1   : > { %v256_v10 = vrot.slane %v255_v9, 2 }
  0xd3   : > { %v257_v12 = vadd.f32 %v256_v10, %v255_v9 }
  0xd5   : > { %v258_v13 = vrot.slane %v257_v12, 1 }
  0xd7   : > { %v259_v16 = vadd.f32 %v258_v13, %v257_v12 }
  0xd9   : > { %v260_v17 = vadd.f32 %v259_v16, %v248_v15 }
  0xdb   : > { %v261_v19 = vmax.f32 %v260_v17, 0.0 }
  0xdd   : > { %v265_v21 = vrot.slane %v261_v19, %v264_v18 }
  0xdf   : > { %v266_v22 = vmul.f32 %v265_v21, %v249_v20 }
  0xe1   : > { %v267_v23 = vsel %vm252_vm0, %v266_v22, 0.0 }
  0xe2   : > { %268 = vadd.xlane.f32.xlu0 %v267_v23 }
 0x16f   : > { %v269_v26 = vpop.xlane.xlu0 %268 }
 0x170   : > { %v270_v27 = vadd.f32 %v269_v26, %v250_v25 }
 0x172   : > { %v271_v28 = vsub.f32 0.0, %v270_v27 }
 0x174   : > { %v272_v29 = vmul.f32 1.442695, %v271_v28 }
 0x176   : > { %436 = vpow2.f32 %v272_v29 }
 0x180   : > { %v437_v30 = vpop.eup %436 }
 0x181   : > { %v274_v31 = vadd.f32 1.0, %v437_v30 }
 0x183   : > { %438 = vrcp.f32 %v274_v31 }
 0x18d   : > { %v439_v32 = vpop.eup %438 }
 0x18e   : > { %279 = vperm.xlu1 %434, %v439_v32  }
 0x20d   : > { %v280_v33 = vpop.permute.xlu1 %279 }
 0x20e   : > { %v282_v34 = vmul.f32 %v280_v33, %v241_v0  ;;  %v283_v35 = vmul.f32 %v280_v33, %v242_v1 }
 0x210   : > { %284 = vst [vmem:[%s240_s9] sm:$0xff] %v282_v34  ;;  %285 = vst [vmem:[%s240_s9 + $0x8] sm:$0xff] %v283_v35 }
 0x211   : > { %483 = shalt.err (!%p480_p4)
}
 0x212   : > { %s484_s13 = scalar_lea.hbm %s706_s15, 256  ;;  %s488_s26 = scalar_lea.hbm %s755_s5, 512 }
 0x213   : > { %p485_p5 = scmp.ne.s32.totalorder %s706_s15, %s484_s13  ;;  %p489_p0 = scmp.lt.u32.totalorder %s706_s15, %s755_s5 }
 0x214   : > { %p490_p1 = scmp.lt.u32.totalorder %s488_s26, %s484_s13  ;;  %p492_p6 = scmp.lt.u32.totalorder %s484_s13, %s706_s15 }
 0x215   : > { %p486_p8 = pnand %p485_p5, %p764_p11 }
 0x216   : > { %p491_p3 = por %p490_p1, %p489_p0 }
 0x217   : > { %p487_p9 = pneg %p486_p8 }
 0x218   : > { %p493_p12 = por %p492_p6, %p491_p3 }
 0x21a   : > { %p494_p13 = pnand %p493_p12, %p487_p9 }
 0x21c   : > { %497 = shalt.err (!%p494_p13)
}
 0x21d   : > { %389 = dma.vmem_to_hbm [thread:$0]  (%p764_p11), %s708_s10, 256, %s706_s15, %s287_s12  }
 0x21e PF: > { %s313_s7 = sand.u32 1, %s524_s18   ;;  %p765_p7 = scmp.ne.s32.totalorder %s760_s6, 0 }
 0x21f   : > { %p766_p10 = scmp.ge.s32.totalorder %s536_s21, 2  ;;  %s314_s9 = scalar_lea.sflag [#allocation4], %s313_s7 }
 0x221   : > { %p396_p2 = pnand %p766_p10, %p765_p7 }
 0x223   : > { %519 = dma.done.wait (!%p396_p2), %s314_s9, 256  }
 0x224   : > { %521 = vsyncadd (!%p396_p2), %s314_s9, 4294967040  ;;  %p18_p4 = scmp.ge.s32.totalorder %s596_s24, 4   ;;  %s767_s18 = smov %s528_s19 }
 0x225   : > { %s768_s19 = smov %s532_s20  ;;  %s769_s20 = smov %s608_s27 }
 0x226   : > { %s770_s21 = smov %s596_s24  ;;  %20 = sbr.rel (!%p18_p4) target bundleno = 5 (0x5), region = 85 }
 0x22d   :  { %319 = vsyncpa [#allocation3], 1 }
 0x22e   :  { %321 = vsyncpa [#allocation3 + $0x1], 1 }
 0x22f   :  { %322 = vsyncpa [#allocation4], 1 }
 0x230   :  { %324 = vsyncpa [#allocation4 + $0x1], 1 }

</bundles_post_ra>
